<compile_context>
chip_gen: v7x
topology: tpu7x:2x2x1
jax: 0.10.0
libtpu: 0.0.40
codegen_flags: <defaults>
</compile_context>

<pallas_src>
import jax
import jax.numpy as jnp
from jax.experimental import pallas as pl
from jax.experimental.pallas import tpu as pltpu


def _self_attention_kernel(x_ref, w1_ref, b1_ref, w2_ref, out_ref, weights_ref):
    # x_ref: (BB, T, H);  w1_ref: (H, P);  b1_ref: (1, P);  w2_ref: (1, P)
    # out_ref: (BB, H);   weights_ref: (BB, T)
    BB, T, H = x_ref.shape
    P = w1_ref.shape[1]
    x = x_ref[...]

    # Fused projection: a single (BB*T, H) @ (H, P) MXU matmul + bias + ReLU.
    # The reshape only collapses the two leading dims, so it is a layout no-op
    # whenever T % 8 == 0 (sublane aligned); for other T it may materialize one
    # VMEM copy but remains correct.
    h = jnp.dot(x.reshape(BB * T, H), w1_ref[...],
                preferred_element_type=jnp.float32)
    h = jnp.maximum(h + b1_ref[...], 0.0)                        # (BB*T, P)

    # Second Linear has N=1: keep it off the MXU -- VPU broadcast-mul + lane
    # reduce.  The b2 scalar bias is intentionally omitted: softmax is
    # shift-invariant, so weights/outputs are mathematically unchanged.
    e = jnp.sum(h.reshape(BB, T, P) * w2_ref[...], axis=-1)      # (BB, T)

    # Softmax over T.  Exact divide (weights sum to 1 to f32 accuracy) -- the
    # approx EUP reciprocal previously used here cost accuracy for zero gain.
    m = jnp.max(e, axis=-1, keepdims=True)                       # (BB, 1)
    p = jnp.exp(e - m)                                           # (BB, T)
    w = p / jnp.sum(p, axis=-1, keepdims=True)                   # (BB, T)

    # Weighted sum over T on the VPU: out[b, :] = sum_t w[b, t] * x[b, t, :].
    out = jnp.sum(x.astype(jnp.float32) * w[..., None], axis=1)  # (BB, H)

    out_ref[...] = out.astype(out_ref.dtype)
    weights_ref[...] = w.astype(weights_ref.dtype)


def _vmem_capacity_bytes() -> int:
    """Per-core VMEM capacity (128 MiB v5e/v6e, 64 MiB/TC v7x); safe fallback."""
    try:
        cap = getattr(pltpu.get_tpu_info(), "vmem_capacity_bytes", None)
        if cap:
            return int(cap)
    except Exception:
        pass
    return 64 * 1024 * 1024  # conservative: assume v7x per-TC VMEM


def self_attention(encoder_outputs, w1, b1, w2, b2, *, block_b=None):
    """encoder_outputs: [B, T, H]. Returns (outputs [B, H], weights [B, T]).

    b2 is accepted for interface parity with the PyTorch module but unused:
    adding a scalar to every energy does not change softmax weights/outputs.
    """
    del b2  # softmax shift-invariance: exact no-op
    B, T, H = encoder_outputs.shape
    P = w1.shape[1]  # projection width (64 in the module)
    itemsize = jnp.dtype(encoder_outputs.dtype).itemsize

    # ---- VMEM-aware batch-block sizing.  The kernel is HBM-read-bound on x,
    # so move as many bytes per grid step as VMEM allows without spilling. ----
    vmem_cap = _vmem_capacity_bytes()
    vmem_budget = min((vmem_cap * 3) // 4, 96 * 1024 * 1024)

    # Per-batch-row VMEM bytes per grid step, *including* in-kernel temporaries.
    per_row = (
        2 * T * H * itemsize          # double-buffered x slab
        + T * P * 4                   # ReLU(x @ w1 + b1) temporary (f32)
        + T * H * 4                   # x * w[..., None] product temporary (f32)
        + 2 * (H + T) * itemsize      # double-buffered output slabs
    )
    params_bytes = 2 * (H * P + 2 * P) * 4   # resident w1 / b1 / w2 tiles

    if block_b is None:
        bb_budget = max(8, ((vmem_budget - params_bytes) // per_row) // 8 * 8)
        # Prefer >= 2 grid steps for large batches so the ("parallel",) batch
        # axis can shard across v7x's two TensorCores.
        bb_two_steps = max(8, pl.cdiv(pl.cdiv(B, 2), 8) * 8)
        block_b = min(bb_budget, bb_two_steps)

    if block_b >= B:
        BB = B                              # single step; blocks == full array dims
    else:
        BB = min(max(8, (block_b // 8) * 8), B)   # sublane-aligned partial blocks
    grid = (pl.cdiv(B, BB),)                # padded tail block: rows independent,
                                            # out-of-range stores are clipped

    footprint = BB * per_row + params_bytes
    vmem_limit = int(min(vmem_cap,
                         max(32 * 1024 * 1024, footprint + 16 * 1024 * 1024)))

    b1_2d = b1.reshape(1, P)
    w2_row = w2.reshape(1, P)               # (P, 1) weight column as a row vector

    out_shapes = (
        jax.ShapeDtypeStruct((B, H), encoder_outputs.dtype),
        jax.ShapeDtypeStruct((B, T), encoder_outputs.dtype),
    )

    grid_spec = pltpu.PrefetchScalarGridSpec(
        num_scalar_prefetch=0,
        grid=grid,
        in_specs=[
            pl.BlockSpec((BB, T, H), lambda b: (b, 0, 0)),   # x: BB batch rows
            pl.BlockSpec((H, P), lambda b: (0, 0)),          # w1 (resident)
            pl.BlockSpec((1, P), lambda b: (0, 0)),          # b1 (resident)
            pl.BlockSpec((1, P), lambda b: (0, 0)),          # w2 row (resident)
        ],
        out_specs=[
            pl.BlockSpec((BB, H), lambda b: (b, 0)),         # outputs slab
            pl.BlockSpec((BB, T), lambda b: (b, 0)),         # weights slab
        ],
    )

    return pl.pallas_call(
        _self_attention_kernel,
        out_shape=out_shapes,
        grid_spec=grid_spec,
        compiler_params=pltpu.CompilerParams(
            dimension_semantics=("parallel",),   # batch blocks shard across TCs
            vmem_limit_bytes=vmem_limit),
    )(encoder_outputs, w1, b1_2d, w2_row)


def _reference(encoder_outputs, w1, b1, w2, b2):
    hp = jax.lax.Precision.HIGHEST   # accurate f32 matmuls for the comparison
    h = jnp.maximum(
        jnp.einsum("bth,hp->btp", encoder_outputs, w1, precision=hp) + b1, 0.0)
    energy = (jnp.einsum("btp,po->bto", h, w2, precision=hp) + b2)[..., 0]
    weights = jax.nn.softmax(energy, axis=1)
    outputs = jnp.sum(encoder_outputs * weights[..., None], axis=1)
    return outputs, weights


if __name__ == "__main__":
    # Small shapes consistent with the module: batch=2, seq=8, hidden_dim=128.
    B, T, H = 2, 8, 128

    key = jax.random.PRNGKey(0)
    k_x, k_w1, k_b1, k_w2, k_b2 = jax.random.split(key, 5)

    x = jax.random.normal(k_x, (B, T, H), dtype=jnp.float32)
    # Synthetic parameters; shapes follow nn.Linear(H, 64) / nn.Linear(64, 1)
    # (stored transposed relative to torch's .weight, i.e. math layout).
    w1 = jax.random.normal(k_w1, (H, 64), dtype=jnp.float32) * 0.1
    b1 = jax.random.normal(k_b1, (64,), dtype=jnp.float32) * 0.1
    w2 = jax.random.normal(k_w2, (64, 1), dtype=jnp.float32) * 0.1
    b2 = jax.random.normal(k_b2, (1,), dtype=jnp.float32) * 0.1

    outputs, weights = self_attention(x, w1, b1, w2, b2)
    jax.block_until_ready((outputs, weights))

    ref_out, ref_w = _reference(x, w1, b1, w2, b2)
    assert outputs.shape == (B, H) and weights.shape == (B, T)
    # Softmax is exact now; the tolerance only covers f32-matmul precision
    # differences between the Mosaic kernel and the XLA reference on TPU.
    assert jnp.allclose(weights, ref_w, atol=2e-3, rtol=2e-3), \
        float(jnp.max(jnp.abs(weights - ref_w)))
    assert jnp.allclose(outputs, ref_out, atol=2e-3, rtol=2e-3), \
        float(jnp.max(jnp.abs(outputs - ref_out)))

    print("KERNEL_OK")
</pallas_src>

<mosaic_0001>
module attributes {stable_mosaic.version = 11 : i64} {
  func.func @_self_attention_kernel(%arg0: i32, %arg1: memref<2x8x128xf32, #tpu.memory_space<vmem>>, %arg2: memref<128x64xf32, #tpu.memory_space<vmem>>, %arg3: memref<1x64xf32, #tpu.memory_space<vmem>>, %arg4: memref<1x64xf32, #tpu.memory_space<vmem>>, %arg5: memref<2x128xf32, #tpu.memory_space<vmem>>, %arg6: memref<2x8xf32, #tpu.memory_space<vmem>>) attributes {dimension_semantics = [#tpu.dimension_semantics<parallel>], iteration_bounds = array<i64: 1>, scalar_prefetch = 0 : i64, scratch_operands = 0 : i64, tpu.core_type = #tpu.core_type<tc>, window_params = [{transform_indices = @transform_0, window_bounds = array<i64: 2, 8, 128>}, {pipeline_mode = #tpu.pipeline_mode<synchronous>, transform_indices = @transform_1, window_bounds = array<i64: 128, 64>}, {pipeline_mode = #tpu.pipeline_mode<synchronous>, transform_indices = @transform_2, window_bounds = array<i64: 1, 64>}, {pipeline_mode = #tpu.pipeline_mode<synchronous>, transform_indices = @transform_3, window_bounds = array<i64: 1, 64>}, {transform_indices = @transform_4, window_bounds = array<i64: 2, 128>}, {transform_indices = @transform_5, window_bounds = array<i64: 2, 8>}]} {
    %c0 = arith.constant 0 : index
    %c0_0 = arith.constant 0 : index
    %c0_1 = arith.constant 0 : index
    %0 = vector.load %arg1[%c0, %c0_0, %c0_1] : memref<2x8x128xf32, #tpu.memory_space<vmem>>, vector<2x8x128xf32>
    %1 = vector.shape_cast %0 : vector<2x8x128xf32> to vector<16x128xf32>
    %c0_2 = arith.constant 0 : index
    %c0_3 = arith.constant 0 : index
    %2 = vector.load %arg2[%c0_2, %c0_3] : memref<128x64xf32, #tpu.memory_space<vmem>>, vector<128x64xf32>
    %cst = arith.constant dense<0.000000e+00> : vector<16x64xf32>
    %3 = tpu.matmul %1, %2, %cst {dimension_numbers = #tpu.dot_dimension_numbers<[1], [0], [0], [1], [0, 0, 1, 1], [], []>} : vector<16x128xf32>, vector<128x64xf32>, vector<16x64xf32> -> vector<16x64xf32>
    %c0_4 = arith.constant 0 : index
    %c0_5 = arith.constant 0 : index
    %4 = vector.load %arg3[%c0_4, %c0_5] : memref<1x64xf32, #tpu.memory_space<vmem>>, vector<1x64xf32>
    %5 = vector.broadcast %4 : vector<1x64xf32> to vector<16x64xf32>
    %6 = arith.addf %3, %5 : vector<16x64xf32>
    %cst_6 = arith.constant 0.000000e+00 : f32
    %7 = vector.broadcast %cst_6 : f32 to vector<16x64xf32>
    %8 = arith.maximumf %6, %7 : vector<16x64xf32>
    %9 = vector.shape_cast %8 : vector<16x64xf32> to vector<2x8x64xf32>
    %c0_7 = arith.constant 0 : index
    %c0_8 = arith.constant 0 : index
    %10 = vector.load %arg4[%c0_7, %c0_8] : memref<1x64xf32, #tpu.memory_space<vmem>>, vector<1x64xf32>
    %11 = vector.shape_cast %10 : vector<1x64xf32> to vector<1x1x64xf32>
    %12 = vector.broadcast %11 : vector<1x1x64xf32> to vector<2x8x64xf32>
    %13 = arith.mulf %9, %12 : vector<2x8x64xf32>
    %cst_9 = arith.constant dense<0.000000e+00> : vector<2x8xf32>
    %14 = vector.multi_reduction <add>, %13, %cst_9 [2] : vector<2x8x64xf32> to vector<2x8xf32>
    %cst_10 = arith.constant dense<0xFF800000> : vector<2xf32>
    %15 = vector.multi_reduction <maximumf>, %14, %cst_10 [1] : vector<2x8xf32> to vector<2xf32>
    %16 = vector.shape_cast %15 : vector<2xf32> to vector<2x1xf32>
    %17 = vector.broadcast %16 : vector<2x1xf32> to vector<2x8xf32>
    %18 = arith.subf %14, %17 : vector<2x8xf32>
    %19 = math.exp %18 : vector<2x8xf32>
    %cst_11 = arith.constant dense<0.000000e+00> : vector<2xf32>
    %20 = vector.multi_reduction <add>, %19, %cst_11 [1] : vector<2x8xf32> to vector<2xf32>
    %21 = vector.shape_cast %20 : vector<2xf32> to vector<2x1xf32>
    %22 = vector.broadcast %21 : vector<2x1xf32> to vector<2x8xf32>
    %23 = arith.divf %19, %22 : vector<2x8xf32>
    %24 = vector.shape_cast %23 : vector<2x8xf32> to vector<2x8x1xf32>
    %25 = vector.broadcast %24 : vector<2x8x1xf32> to vector<2x8x128xf32>
    %26 = arith.mulf %0, %25 : vector<2x8x128xf32>
    %cst_12 = arith.constant dense<0.000000e+00> : vector<2x128xf32>
    %27 = vector.multi_reduction <add>, %26, %cst_12 [1] : vector<2x8x128xf32> to vector<2x128xf32>
    %c0_13 = arith.constant 0 : index
    %c0_14 = arith.constant 0 : index
    %28 = vector.load %arg5[%c0_13, %c0_14] : memref<2x128xf32, #tpu.memory_space<vmem>>, vector<2x128xf32>
    tpu.vector_store %arg5[%c0_13, %c0_14], %27 {strides = array<i32>} : memref<2x128xf32, #tpu.memory_space<vmem>>, vector<2x128xf32>,
    %c0_15 = arith.constant 0 : index
    %c0_16 = arith.constant 0 : index
    %29 = vector.load %arg6[%c0_15, %c0_16] : memref<2x8xf32, #tpu.memory_space<vmem>>, vector<2x8xf32>
    tpu.vector_store %arg6[%c0_15, %c0_16], %23 {strides = array<i32>} : memref<2x8xf32, #tpu.memory_space<vmem>>, vector<2x8xf32>,
    return
  }
  func.func @transform_0(%arg0: i32) -> (i32, i32, i32) {
    %c0_i32 = arith.constant 0 : i32
    %c0_i32_0 = arith.constant 0 : i32
    %c0_i32_1 = arith.constant 0 : i32
    return %arg0, %c0_i32, %c0_i32_0 : i32, i32, i32
  }
  func.func @transform_1(%arg0: i32) -> (i32, i32) {
    %c0_i32 = arith.constant 0 : i32
    %c0_i32_0 = arith.constant 0 : i32
    %c0_i32_1 = arith.constant 0 : i32
    return %c0_i32, %c0_i32_0 : i32, i32
  }
  func.func @transform_2(%arg0: i32) -> (i32, i32) {
    %c0_i32 = arith.constant 0 : i32
    %c0_i32_0 = arith.constant 0 : i32
    %c0_i32_1 = arith.constant 0 : i32
    return %c0_i32, %c0_i32_0 : i32, i32
  }
  func.func @transform_3(%arg0: i32) -> (i32, i32) {
    %c0_i32 = arith.constant 0 : i32
    %c0_i32_0 = arith.constant 0 : i32
    %c0_i32_1 = arith.constant 0 : i32
    return %c0_i32, %c0_i32_0 : i32, i32
  }
  func.func @transform_4(%arg0: i32) -> (i32, i32) {
    %c0_i32 = arith.constant 0 : i32
    %c0_i32_0 = arith.constant 0 : i32
    return %arg0, %c0_i32 : i32, i32
  }
  func.func @transform_5(%arg0: i32) -> (i32, i32) {
    %c0_i32 = arith.constant 0 : i32
    %c0_i32_0 = arith.constant 0 : i32
    return %arg0, %c0_i32 : i32, i32
  }
}

</mosaic_0001>

<bundles_post_ra>
// kernel: tpu_custom_call.1
= control target key start
LH: loop header
LB: loop body
LE: loop exit
PB: predicated region body
PF: predicated region fallthrough
CT: control target
= control target key end

     0   :  { %11 = vsyncpa [#allocation3], 0  ;;  %s559_s0 = inlined_call_operand.vmem [shape: f32[2,8,128], index: 0, kind: input, shape index: {}]   ;;  %s560_s1 = inlined_call_operand.vmem [shape: f32[128,64], index: 1, kind: input, shape index: {}]   ;;  %s561_s2 = inlined_call_operand.vmem [shape: f32[1,64], index: 2, kind: input, shape index: {}]   ;;  %s562_s3 = inlined_call_operand.vmem [shape: f32[1,64], index: 3, kind: input, shape index: {}]   ;;  %s563_s4 = inlined_call_operand.hbm [shape: f32[2,128], index: 4, kind: output, shape index: {0}]   ;;  %s564_s5 = inlined_call_operand.hbm [shape: f32[2,8], index: 5, kind: output, shape index: {1}]  }
   0x1   :  { %v23_v0 = vld [vmem:[%s560_s1] sm:$0xff]  ;;  %v24_v1 = vld [vmem:[%s560_s1 + $0x8] sm:$0xff]  ;;  %v25_v2 = vld [vmem:[%s560_s1 + $0x10] sm:$0xff] }
   0x2   :  { %v334_v3 = vpack.c.bf16 %v24_v1, %v23_v0  ;;  %v26_v4 = vld [vmem:[%s560_s1 + $0x18] sm:$0xff]  ;;  %v27_v6 = vld [vmem:[%s560_s1 + $0x20] sm:$0xff]  ;;  %v28_v7 = vld [vmem:[%s560_s1 + $0x28] sm:$0xff] }
   0x3   :  { %v338_v5 = vpack.c.bf16 %v26_v4, %v25_v2  ;;  %v342_v8 = vpack.c.bf16 %v28_v7, %v27_v6  ;;  %v481_v9 = vld [vmem:[%s559_s0] sm:$0xff]  ;;  %v29_v10 = vld [vmem:[%s560_s1 + $0x30] sm:$0xff]  ;;  %v30_v11 = vld [vmem:[%s560_s1 + $0x38] sm:$0xff] }
   0x4   :  { %335 = vmatprep.subr.bf16.mxu0 %v334_v3  ;;  %331 = vmatprep.mubr.f32.mxu0 %v481_v9 }
   0x5   :  { %337 = vmatpush3.bf16.msra.mxu0 %v334_v3 }
   0x6   :  { %339 = vmatprep.subr.bf16.mxu0 %v338_v5 }
   0x7   :  { %12 = vsyncpa [#allocation5], 0  ;;  %v346_v12 = vpack.c.bf16 %v30_v11, %v29_v10  ;;  %v31_v13 = vld [vmem:[%s560_s1 + $0x40] sm:$0xff]  ;;  %v32_v14 = vld [vmem:[%s560_s1 + $0x48] sm:$0xff]  ;;  %vm132_vm0 = vcmask 523264   ;;  %v141_v38 = vlaneseq  ;;  %vm151_vm1 = vcmask 1041409  }
   0x8   :  { %v350_v15 = vpack.c.bf16 %v32_v14, %v31_v13  ;;  %v33_v16 = vld [vmem:[%s560_s1 + $0x50] sm:$0xff]  ;;  %v34_v17 = vld [vmem:[%s560_s1 + $0x58] sm:$0xff]  ;;  %v35_v19 = vld [vmem:[%s560_s1 + $0x60] sm:$0xff]  ;;  %vm154_vm2 = vcmask 58368   ;;  %v427_v48 = vmov 0  }
   0x9   :  { %341 = vmatpush3.bf16.msra.mxu0 %v338_v5  ;;  %v354_v18 = vpack.c.bf16 %v34_v17, %v33_v16  ;;  %v36_v20 = vld [vmem:[%s560_s1 + $0x68] sm:$0xff]  ;;  %v37_v22 = vld [vmem:[%s560_s1 + $0x70] sm:$0xff]  ;;  %v38_v23 = vld [vmem:[%s560_s1 + $0x78] sm:$0xff]  ;;  %v142_v39 = vand.u32 127, %v141_v38  ;;  %v144_v40 = vshrl.u32 %v141_v38, 7  ;;  %370 = vset.pattern.permute.xlu0 %v427_v48 }
   0xa   :  { %343 = vmatprep.subr.bf16.mxu0 %v342_v8  ;;  %v358_v21 = vpack.c.bf16 %v36_v20, %v35_v19  ;;  %v362_v24 = vpack.c.bf16 %v38_v23, %v37_v22  ;;  %v517_v25 = vld [vmem:[%s559_s0 + $0x8] sm:$0xff]  ;;  %v279_v26 = vld [vmem:[%s561_s2] ss:$0 sm:$0xff]  ;;  %369 = vset.pattern.permute.xlu1 %v427_v48  ;;  %s428_s0 = smov [#allocation4]  }
   0xb   :  { %v280_v31 = vld [vmem:[%s562_s3] ss:$0 sm:$0xff]  ;;  %v145_v42 = vsub.s32 %v142_v39, %v144_v40  ;;  %v161_v49 = vsub.s32 0, %v144_v40  ;;  %v165_v50 = vsub.s32 1, %v144_v40  ;;  %s267_s2 = sshll.u32 %s428_s0, 4  ;;  %s268_s2 = int_to_ptr.vmem [resolvable:$true] %s267_s2 }
   0xc   :  { %s379_s3 = scalar_lea.vmem %s268_s2, 32  ;;  %p384_p1 = scmp.lt.s32.totalorder %s268_s2, %s268_s2 }
   0xd   :  { %345 = vmatpush3.bf16.msra.mxu0 %v342_v8  ;;  %p380_p0 = scmp.ne.s32.totalorder %s268_s2, %s379_s3  ;;  %p385_p2 = scmp.lt.s32.totalorder %s379_s3, %s379_s3 }
   0xe   :  { %347 = vmatprep.subr.bf16.mxu0 %v346_v12 }
   0xf   :  { %p386_p3 = por %p385_p2, %p384_p1 }
  0x11   :  { %349 = vmatpush3.bf16.msra.mxu0 %v346_v12  ;;  %p387_p4 = pnand %p386_p3, %p380_p0 }
  0x12   :  { %351 = vmatprep.subr.bf16.mxu0 %v350_v15 }
  0x15   :  { %353 = vmatpush3.bf16.msra.mxu0 %v350_v15 }
  0x16   :  { %355 = vmatprep.subr.bf16.mxu0 %v354_v18 }
  0x19   :  { %357 = vmatpush3.bf16.msra.mxu0 %v354_v18 }
  0x1a   :  { %359 = vmatprep.subr.bf16.mxu0 %v358_v21 }
  0x1d   :  { %361 = vmatpush3.bf16.msra.mxu0 %v358_v21 }
  0x1e   :  { %363 = vmatprep.subr.bf16.mxu0 %v362_v24 }
  0x21   :  { %365 = vmatpush3.bf16.msra.mxu0 %v362_v24 }
  0x24   :  { %332 = vmatmul.mubr.f32.vlgmr.msra.gmra.mrb[0].mxu0 %v517_v25 }
  0xf7   :  { %v333_v27 = vpop.f32.mrb[0].mxu0 }
  0xf8   :  { %v118_v28 = vadd.f32 %v333_v27, %v279_v26  ;;  %v112_v29 = vpop.f32.mrb[1].mxu0 }
  0xf9   :  { %v113_v30 = vadd.f32 %v279_v26, %v112_v29 }
  0xfa   :  { %v122_v32 = vmax.f32 %v118_v28, 0.0 }
  0xfb   :  { %v121_v33 = vmax.f32 %v113_v30, 0.0 }
  0xfc   :  { %v131_v36 = vmul.f32 %v280_v31, %v122_v32 }
  0xfd   :  { %v130_v34 = vmul.f32 %v280_v31, %v121_v33 }
  0xfe   :  { %v136_v37 = vsel %vm132_vm0, %v131_v36, 0.0 }
  0xff   :  { %v133_v35 = vsel %vm132_vm0, %v130_v34, 0.0 }
 0x100   :  { %134 = vadd.xlane.f32.xlu0 %v133_v35 }
 0x104   :  { %137 = vadd.xlane.f32.xlu0 %v136_v37 }
 0x18d   :  { %v135_v41 = vpop.xlane.xlu0 %134 }
 0x18e   :  { %v146_v44 = vrot.slane %v135_v41, %v145_v42 }
 0x191   :  { %v138_v43 = vpop.xlane.xlu0 %137 }
 0x192   :  { %v150_v45 = vrot.slane %v138_v43, %v145_v42 }
 0x194   :  { %v152_v46 = vsel %vm151_vm1, %v150_v45, %v146_v44 }
 0x195   :  { %v155_v47 = vsel %vm154_vm2, %v152_v46, -inf }
 0x196   :  { %156 = vmax.xlane.f32.xlu1 %v155_v47 }
 0x223   :  { %v157_v51 = vpop.xlane.xlu1 %156 }
 0x224   :  { %v162_v52 = vrot.slane %v157_v51, %v161_v49  ;;  %v166_v53 = vrot.slane %v157_v51, %v165_v50 }
 0x226   :  { %v169_v54 = vsub.f32 %v135_v41, %v162_v52  ;;  %v170_v55 = vsub.f32 %v138_v43, %v166_v53 }
 0x228   :  { %v171_v56 = vmul.f32 1.442695, %v169_v54  ;;  %v173_v57 = vmul.f32 1.442695, %v170_v55 }
 0x22a   :  { %371 = vpow2.f32 %v171_v56 }
 0x22b   :  { %373 = vpow2.f32 %v173_v57 }
 0x234   :  { %v372_v58 = vpop.eup %371 }
 0x235   :  { %v374_v59 = vpop.eup %373  ;;  %178 = vperm.xlu1 %369, %v372_v58  }
 0x236   :  { %181 = vperm.xlu0 %370, %v374_v59  }
 0x2b4   :  { %v179_v60 = vpop.permute.xlu1 %178 }
 0x2b5   :  { %v182_v61 = vpop.permute.xlu0 %181  ;;  %v186_v62 = vrot.slane %v179_v60, %v145_v42 }
 0x2b6   :  { %v190_v63 = vrot.slane %v182_v61, %v145_v42 }
 0x2b8   :  { %v191_v0 = vsel %vm151_vm1, %v190_v63, %v186_v62 }
 0x2b9   :  { %v193_v1 = vsel %vm154_vm2, %v191_v0, 0.0 }
 0x2ba   :  { %194 = vadd.xlane.f32.xlu1 %v193_v1 }
 0x347   :  { %v195_v2 = vpop.xlane.xlu1 %194 }
 0x348   :  { %v200_v3 = vrot.slane %v195_v2, %v161_v49  ;;  %v204_v4 = vrot.slane %v195_v2, %v165_v50 }
 0x34a   :  { %375 = vrcp.f32 %v200_v3 }
 0x34b   :  { %377 = vrcp.f32 %v204_v4 }
 0x354   :  { %v376_v5 = vpop.eup %375 }
 0x355   :  { %v208_v6 = vmul.f32 %v376_v5, %v372_v58  ;;  %v378_v7 = vpop.eup %377 }
 0x356   :  { %v210_v8 = vmul.f32 %v378_v7, %v374_v59 }
 0x357   :  { %213 = vperm.xlu0 %370, %v208_v6  }
 0x35b   :  { %218 = vperm.xlu0 %370, %v210_v8  }
 0x3d6   :  { %v214_v10 = vpop.permute.xlu0 %213 }
 0x3d7   :  { %v221_v11 = vmul.f32 %v214_v10, %v481_v9  ;;  %v243_v15 = vrot.slane %v214_v10, %v145_v42 }
 0x3d9   :  { %v223_v12 = vrot.slane %v221_v11, 4 }
 0x3da   :  { %v219_v13 = vpop.permute.xlu0 %218 }
 0x3db   :  { %v224_v14 = vadd.f32 %v223_v12, %v221_v11  ;;  %v222_v16 = vmul.f32 %v219_v13, %v517_v25  ;;  %v247_v17 = vrot.slane %v219_v13, %v145_v42 }
 0x3dd   :  { %v225_v18 = vrot.slane %v224_v14, 2  ;;  %v229_v19 = vrot.slane %v222_v16, 4  ;;  %v248_v20 = vsel %vm151_vm1, %v247_v17, %v243_v15 }
 0x3de   :  { %250 = vst.msk [vmem:[#allocation4] sm:$0x3] %vm154_vm2, %v248_v20 }
 0x3df   :  { %v226_v21 = vadd.f32 %v225_v18, %v224_v14  ;;  %v230_v22 = vadd.f32 %v229_v19, %v222_v16 }
 0x3e0   :  { %390 = shalt.err (!%p387_p4)
}
 0x3e1   :  { %s391_s9 = scalar_lea.hbm %s564_s5, 32 }
 0x3e2   :  { %p392_p5 = scmp.ne.s32.totalorder %s564_s5, %s391_s9  ;;  %p395_p6 = scmp.lt.u32.totalorder %s391_s9, %s564_s5 }
 0x3e4   :  { %p397_p7 = pnand %p395_p6, %p392_p5 }
 0x3e6   :  { %400 = shalt.err (!%p397_p7)
}
 0x3e7   :  { %270 = dma.vmem_to_hbm [thread:$0]  %s268_s2, 32, %s564_s5, [#allocation5]   ;;  %v231_v9 = vrot.slane %v230_v22, 2  ;;  %v227_v24 = vrot.slane %v226_v21, 1 }
 0x3e8   :  { %s429_s16 = smov [#allocation2]  }
 0x3e9   :  { %v232_v23 = vadd.f32 %v231_v9, %v230_v22  ;;  %s257_s17 = sshll.u32 %s429_s16, 4  ;;  %v228_v26 = vadd.f32 %v227_v24, %v226_v21  ;;  %s258_s17 = int_to_ptr.vmem [resolvable:$true] %s257_s17 }
 0x3ea   :  { %s401_s18 = scalar_lea.vmem %s258_s17, 32  ;;  %p406_p9 = scmp.lt.s32.totalorder %s258_s17, %s258_s17 }
 0x3eb   :  { %v233_v25 = vrot.slane %v232_v23, 1  ;;  %p402_p8 = scmp.ne.s32.totalorder %s258_s17, %s401_s18  ;;  %p407_p10 = scmp.lt.s32.totalorder %s401_s18, %s401_s18 }
 0x3ed   :  { %v234_v27 = vadd.f32 %v233_v25, %v232_v23  ;;  %p408_p11 = por %p407_p10, %p406_p9 }
 0x3ef   :  { %v237_v28 = vsel %vm151_vm1, %v234_v27, %v228_v26  ;;  %p409_p12 = pnand %p408_p11, %p402_p8 }
 0x3f0   :  { %239 = vst [vmem:[#allocation2] sm:$0x3] %v237_v28 }
 0x3f1   :  { %412 = shalt.err (!%p409_p12)
}
 0x3f2   :  { %s413_s20 = scalar_lea.hbm %s563_s4, 32 }
 0x3f3   :  { %p414_p13 = scmp.ne.s32.totalorder %s563_s4, %s413_s20  ;;  %p417_p0 = scmp.lt.u32.totalorder %s413_s20, %s563_s4 }
 0x3f5   :  { %p419_p1 = pnand %p417_p0, %p414_p13 }
 0x3f7   :  { %422 = shalt.err (!%p419_p1)
}
 0x3f8   :  { %260 = dma.vmem_to_hbm [thread:$0]  %s258_s17, 32, %s563_s4, [#allocation3]  }
 0x3f9   :  { %423 = dma.done.wait [#allocation3], 32  }
 0x3fa   :  { %424 = vsyncadd [#allocation3], 4294967264 }
 0x3fb   :  { %425 = dma.done.wait [#allocation5], 32  }
 0x3fc   :  { %426 = vsyncadd [#allocation5], 4294967264 }
 0x3fd   :  { %277 = vsyncpa [#allocation3], 1 }
 0x3fe   :  { %278 = vsyncpa [#allocation5], 1 }

</bundles_post_ra>
